<compile_context>
chip_gen: v6e
topology: v6e:2x2x1
jax: 0.10.0
libtpu: 0.0.40
codegen_flags: <defaults>
</compile_context>

<pallas_src>
import functools
import math

import jax
import jax.numpy as jnp
from jax.experimental import pallas as pl
from jax.experimental.pallas import tpu as pltpu


def _round_up(x, m):
    return (x + m - 1) // m * m


def _pad2d(a, rows, cols):
    r, c = a.shape
    if r == rows and c == cols:
        return a
    return jnp.pad(a, ((0, rows - r), (0, cols - c)))


def _masked_layernorm_residual(y, gamma, beta, res, *, e_real, eps):
    """LayerNorm over the first `e_real` columns of a zero-padded (rows, E_pad) tile,
    then affine + residual.  Padded output columns equal the (zero) residual columns."""
    mu = jnp.sum(y, axis=-1, keepdims=True) * (1.0 / e_real)
    d = y - mu
    col = jax.lax.broadcasted_iota(jnp.int32, y.shape, y.ndim - 1)
    dm = jnp.where(col < e_real, d, 0.0)
    var = jnp.sum(dm * dm, axis=-1, keepdims=True) * (1.0 / e_real)
    yn = d * jax.lax.rsqrt(var + eps)
    return yn * gamma + beta + res


# ---------------------------------------------------------------------------
# 1) Grouped-head self-attention fused with Norm1 (+ residual)
# ---------------------------------------------------------------------------
def _attn_norm_kernel(x_ref, wqkv_ref, bias_ref, wl_ref, bl_ref, g_ref, bt_ref, o_ref,
                      *, e_real, eps):
    cdt = wqkv_ref.dtype               # matmul operand dtype (f32, or bf16 on v6e/v7x)
    x = x_ref[...]                     # (GS, E_pad)
    ep = x.shape[-1]

    # Single fused QKV projection (1/sqrt(E) scale already folded into the Wq columns).
    qkv = jnp.dot(x.astype(cdt), wqkv_ref[...], preferred_element_type=jnp.float32)
    q = qkv[:, :ep]
    k = qkv[:, ep:2 * ep]
    v = qkv[:, 2 * ep:]

    # Block-diagonal additive mask keeps the G grouped heads independent.
    # TODO(synk): for long sequences switch to an online-softmax KV-tile loop instead
    # of materializing the full (GS, GS) score tile in VMEM.
    scores = jax.lax.dot_general(q.astype(cdt), k.astype(cdt),
                                 (((1,), (1,)), ((), ())),
                                 preferred_element_type=jnp.float32)
    scores = scores + bias_ref[...]
    m = jnp.max(scores, axis=-1, keepdims=True)
    e = jnp.exp(scores - m)
    ssum = jnp.sum(e, axis=-1, keepdims=True)
    r = pl.reciprocal(ssum, approx=True)      # EUP slot
    r = r * (2.0 - ssum * r)                  # one Newton step -> ~f32-exact
    p = e * r
    att = jnp.dot(p.astype(cdt), v.astype(cdt), preferred_element_type=jnp.float32)

    # Fused Norm (Linear -> LayerNorm) + residual (the residual is the block input).
    y = (jnp.dot(att.astype(cdt), wl_ref[...], preferred_element_type=jnp.float32)
         + bl_ref[...])
    out = _masked_layernorm_residual(y, g_ref[...], bt_ref[...], x.astype(jnp.float32),
                                     e_real=e_real, eps=eps)
    o_ref[...] = out.astype(o_ref.dtype)


def _pick_head_group(B, s, row_cap=512):
    """Largest head-group G (divisor of B) giving 8-aligned row blocks under a row
    cap, preferring >=2 grid steps so both v7x TensorCores get work."""
    cands = [g for g in range(1, B + 1)
             if B % g == 0 and ((g * s) % 8 == 0 or g == B) and g * s <= max(row_cap, s)]
    multi = [g for g in cands if B // g >= 2]
    if multi:
        return max(multi)
    if cands:
        return max(cands)
    return B


def attention_norm_residual(xf, wqkv, wl_t, bl, gamma, beta, *, b, l, nhead, e_real,
                            eps=1e-5):
    """xf: zero-padded flat activations (M, E_pad) with M = b*l.  Returns (M, E_pad)."""
    M, E_pad = xf.shape
    assert l % nhead == 0, "sequence length must be divisible by nhead"
    s = l // nhead
    B = b * nhead
    G = _pick_head_group(B, s)
    GS = G * s

    # Block-diagonal additive mask: 0 within a head, -1e30 across heads.
    hid = jnp.repeat(jnp.arange(G, dtype=jnp.int32), s)
    bias = jnp.where(hid[:, None] == hid[None, :], 0.0, -1e30).astype(jnp.float32)

    ix = jnp.dtype(xf.dtype).itemsize
    iw = jnp.dtype(wqkv.dtype).itemsize
    tile_bytes = (GS * E_pad * ix + 3 * E_pad * E_pad * iw + GS * GS * 4
                  + E_pad * E_pad * iw + 3 * E_pad * 4 + GS * E_pad * ix)
    vmem_limit = int(min(max(2 * tile_bytes + (8 << 20), 16 << 20), 56 << 20))

    cost = pl.CostEstimate(
        flops=int(2 * M * E_pad * 3 * E_pad + 4 * M * GS * E_pad + 2 * M * E_pad * E_pad),
        transcendentals=int(M * GS),
        bytes_accessed=int(ix * 2 * M * E_pad + iw * 4 * E_pad * E_pad),
    )

    return pl.pallas_call(
        functools.partial(_attn_norm_kernel, e_real=e_real, eps=eps),
        out_shape=jax.ShapeDtypeStruct((M, E_pad), xf.dtype),
        grid_spec=pltpu.PrefetchScalarGridSpec(
            num_scalar_prefetch=0,
            grid=(B // G,),
            in_specs=[
                pl.BlockSpec((GS, E_pad), lambda i: (i, 0)),
                pl.BlockSpec((E_pad, 3 * E_pad), lambda i: (0, 0)),
                pl.BlockSpec((GS, GS), lambda i: (0, 0)),
                pl.BlockSpec((E_pad, E_pad), lambda i: (0, 0)),
                pl.BlockSpec((1, E_pad), lambda i: (0, 0)),
                pl.BlockSpec((1, E_pad), lambda i: (0, 0)),
                pl.BlockSpec((1, E_pad), lambda i: (0, 0)),
            ],
            out_specs=pl.BlockSpec((GS, E_pad), lambda i: (i, 0)),
        ),
        compiler_params=pltpu.CompilerParams(
            dimension_semantics=("parallel",),
            vmem_limit_bytes=vmem_limit,
        ),
        cost_estimate=cost,
    )(xf, wqkv, bias, wl_t, bl, gamma, beta)


# ---------------------------------------------------------------------------
# 2) Feed-forward (F-tiled reduction, f32 accumulator) fused with Norm2 (+ residual)
# ---------------------------------------------------------------------------
def _ffn_norm_kernel(x_ref, w1_ref, b1_ref, w2_ref, b2_ref, wl_ref, bl_ref, g_ref, bt_ref,
                     o_ref, acc_ref, *, e_real, eps):
    kk = pl.program_id(1)
    cdt = w1_ref.dtype

    @pl.when(kk == 0)
    def _():
        acc_ref[...] = jnp.zeros_like(acc_ref)

    x = x_ref[...]                                        # (tm, E_pad) — also the residual
    h = (jnp.dot(x.astype(cdt), w1_ref[...], preferred_element_type=jnp.float32)
         + b1_ref[...])
    h = jnp.maximum(h, 0.0)
    acc_ref[...] += jnp.dot(h.astype(cdt), w2_ref[...], preferred_element_type=jnp.float32)

    @pl.when(kk == pl.num_programs(1) - 1)
    def _():
        ffn = acc_ref[...] + b2_ref[...]
        y = (jnp.dot(ffn.astype(cdt), wl_ref[...], preferred_element_type=jnp.float32)
             + bl_ref[...])
        out = _masked_layernorm_residual(y, g_ref[...], bt_ref[...], x.astype(jnp.float32),
                                         e_real=e_real, eps=eps)
        o_ref[...] = out.astype(o_ref.dtype)


def ffn_norm_residual(xf, w1t, b1, w2t, b2, wl_t, bl, gamma, beta, *, e_real, eps=1e-5,
                      tile_m=None, tile_f=None):
    """xf: zero-padded flat activations (M, E_pad).  Returns (M, E_pad)."""
    M, E_pad = xf.shape
    _, F_pad = w1t.shape

    # Row tile: large (HBM roofline), multiple of 8, but keep >=2 parallel steps (v7x).
    tm = tile_m if tile_m is not None else min(512, _round_up(M, 8))
    if tile_m is None and _round_up(M, tm) // tm < 2 and M > 8:
        tm = max(8, _round_up(M, 16) // 2)
    Mp = _round_up(M, tm)

    # F reduction tile: prefer multiples of 256 (full 256-wide MXU fill on v6e/v7x).
    if tile_f is not None:
        tf = tile_f
    elif F_pad % 512 == 0:
        tf = 512
    elif F_pad % 256 == 0:
        tf = 256
    else:
        tf = 128

    x_in = xf if Mp == M else jnp.pad(xf, ((0, Mp - M), (0, 0)))

    ix = jnp.dtype(xf.dtype).itemsize
    iw = jnp.dtype(w1t.dtype).itemsize
    tile_bytes = (tm * E_pad * ix + E_pad * tf * iw + tf * 4 + tf * E_pad * iw
                  + E_pad * 4 + E_pad * E_pad * iw + 3 * E_pad * 4 + tm * E_pad * ix)
    vmem_limit = int(min(max(2 * tile_bytes + tm * E_pad * 4 + (8 << 20), 16 << 20),
                         56 << 20))

    cost = pl.CostEstimate(
        flops=int(4 * Mp * E_pad * F_pad + 2 * Mp * E_pad * E_pad),
        transcendentals=0,
        bytes_accessed=int(ix * 2 * Mp * E_pad
                           + iw * (2 * E_pad * F_pad + E_pad * E_pad)
                           + 4 * (F_pad + 4 * E_pad)),
    )

    out = pl.pallas_call(
        functools.partial(_ffn_norm_kernel, e_real=e_real, eps=eps),
        out_shape=jax.ShapeDtypeStruct((Mp, E_pad), xf.dtype),
        grid_spec=pltpu.PrefetchScalarGridSpec(
            num_scalar_prefetch=0,
            grid=(Mp // tm, F_pad // tf),
            in_specs=[
                pl.BlockSpec((tm, E_pad), lambda i, kk: (i, 0)),
                pl.BlockSpec((E_pad, tf), lambda i, kk: (0, kk)),
                pl.BlockSpec((1, tf), lambda i, kk: (0, kk)),
                pl.BlockSpec((tf, E_pad), lambda i, kk: (kk, 0)),
                pl.BlockSpec((1, E_pad), lambda i, kk: (0, 0)),
                pl.BlockSpec((E_pad, E_pad), lambda i, kk: (0, 0)),
                pl.BlockSpec((1, E_pad), lambda i, kk: (0, 0)),
                pl.BlockSpec((1, E_pad), lambda i, kk: (0, 0)),
                pl.BlockSpec((1, E_pad), lambda i, kk: (0, 0)),
            ],
            out_specs=pl.BlockSpec((tm, E_pad), lambda i, kk: (i, 0)),
            scratch_shapes=[pltpu.VMEM((tm, E_pad), jnp.float32)],
        ),
        compiler_params=pltpu.CompilerParams(
            dimension_semantics=("parallel", "arbitrary"),
            vmem_limit_bytes=vmem_limit,
        ),
        cost_estimate=cost,
    )(x_in, w1t, b1, w2t, b2, wl_t, bl, gamma, beta)

    return out[:M]


# ---------------------------------------------------------------------------
# Block composition
# ---------------------------------------------------------------------------
def prepare_block_params(wq, wk, wv, wl, bl, gamma, beta, w1, b1, w2, b2,
                         *, compute_dtype=jnp.float32):
    """One-time conversion of torch-layout weights: transpose to (in, out), zero-pad
    E/F to lane-dense multiples of 128, concatenate Wq|Wk|Wv (with the 1/sqrt(E)
    softmax scale folded into Wq), and optionally cast the matmul slabs to bf16
    (recommended for v6e/v7x; biases and LayerNorm affines stay f32)."""
    E = wq.shape[0]
    F = w1.shape[0]
    E_pad = _round_up(E, 128)
    F_pad = _round_up(F, 128)
    scale = 1.0 / math.sqrt(E)
    wqkv = jnp.concatenate(
        [_pad2d(wq.T * scale, E_pad, E_pad),
         _pad2d(wk.T, E_pad, E_pad),
         _pad2d(wv.T, E_pad, E_pad)], axis=1)
    return dict(
        wqkv=wqkv.astype(compute_dtype),
        wl_t=_pad2d(wl.T, E_pad, E_pad).astype(compute_dtype),
        bl=_pad2d(bl.reshape(1, E), 1, E_pad).astype(jnp.float32),
        gamma=_pad2d(gamma.reshape(1, E), 1, E_pad).astype(jnp.float32),
        beta=_pad2d(beta.reshape(1, E), 1, E_pad).astype(jnp.float32),
        w1t=_pad2d(w1.T, E_pad, F_pad).astype(compute_dtype),
        b1=_pad2d(b1.reshape(1, F), 1, F_pad).astype(jnp.float32),
        w2t=_pad2d(w2.T, F_pad, E_pad).astype(compute_dtype),
        b2=_pad2d(b2.reshape(1, E), 1, E_pad).astype(jnp.float32),
    )


def block_forward(pos_x, params, *, nhead, eps=1e-5):
    b, l, E = pos_x.shape
    assert l % nhead == 0, "sequence length must be divisible by nhead"
    E_pad = params["wl_t"].shape[0]
    M = b * l

    xf = pos_x.reshape(M, E)
    if E_pad != E:
        xf = jnp.pad(xf, ((0, 0), (0, E_pad - E)))     # padded once; unpadded once at the end

    n1 = attention_norm_residual(
        xf, params["wqkv"], params["wl_t"], params["bl"], params["gamma"], params["beta"],
        b=b, l=l, nhead=nhead, e_real=E, eps=eps)
    out = ffn_norm_residual(
        n1, params["w1t"], params["b1"], params["w2t"], params["b2"],
        params["wl_t"], params["bl"], params["gamma"], params["beta"],
        e_real=E, eps=eps)

    return out[:, :E].reshape(b, l, E)


if __name__ == "__main__":
    batch, seq, embedding_num, nhead, feed_num = 2, 8, 32, 2, 64
    E, F = embedding_num, feed_num

    key = jax.random.PRNGKey(0)
    (kx, kwq, kwk, kwv, kwl, kbl, kw1, kb1, kw2, kb2) = jax.random.split(key, 10)

    x = jax.random.normal(kx, (batch, seq, E), dtype=jnp.float32)

    def uni(k, shape, fan_in):
        lim = 1.0 / math.sqrt(fan_in)
        return jax.random.uniform(k, shape, jnp.float32, -lim, lim)

    # nn.Linear-style init (weight/bias uniform(-1/sqrt(in), 1/sqrt(in)))
    wq = uni(kwq, (E, E), E)
    wk = uni(kwk, (E, E), E)
    wv = uni(kwv, (E, E), E)
    wl = uni(kwl, (E, E), E)
    bl = uni(kbl, (E,), E)
    gamma = jnp.ones((E,), jnp.float32)    # LayerNorm default affine init
    beta = jnp.zeros((E,), jnp.float32)
    w1 = uni(kw1, (F, E), E)
    b1 = uni(kb1, (F,), E)
    w2 = uni(kw2, (E, F), F)
    b2 = uni(kb2, (E,), F)

    # f32 compute keeps the self-check tight; pass compute_dtype=jnp.bfloat16 on v6e/v7x.
    params = prepare_block_params(wq, wk, wv, wl, bl, gamma, beta, w1, b1, w2, b2)

    block_fn = jax.jit(functools.partial(block_forward, nhead=nhead))
    out = block_fn(x, params)
    jax.block_until_ready(out)

    # Pure-JAX reference following the PyTorch Block forward exactly.
    def norm_ref(z):
        y = z @ wl.T + bl
        mu = y.mean(-1, keepdims=True)
        var = ((y - mu) ** 2).mean(-1, keepdims=True)
        return (y - mu) / jnp.sqrt(var + 1e-5) * gamma + beta

    xh = x.reshape(batch, nhead, -1, E)
    Q = xh @ wq.T
    K = xh @ wk.T
    V = xh @ wv.T
    score = jax.nn.softmax((Q @ jnp.swapaxes(K, -1, -2)) / math.sqrt(E), axis=-1)
    att_ref = (score @ V).reshape(batch, seq, E)
    n1_ref = norm_ref(att_ref) + x
    ffn_ref = jnp.maximum(n1_ref @ w1.T + b1, 0.0) @ w2.T + b2
    ref = norm_ref(ffn_ref) + n1_ref

    assert out.shape == (batch, seq, E)
    # 1e-3 tolerance: f32 compute with EUP approx-reciprocal + Newton refinement.
    err = float(jnp.max(jnp.abs(out - ref)))
    assert jnp.allclose(out, ref, atol=1e-3, rtol=1e-3), err

    print("KERNEL_OK")
</pallas_src>

<mosaic_0001>
module attributes {stable_mosaic.version = 11 : i64} {
  func.func @_attn_norm_kernel(%arg0: i32, %arg1: memref<8x128xf32, #tpu.memory_space<vmem>>, %arg2: memref<128x384xf32, #tpu.memory_space<vmem>>, %arg3: memref<8x8xf32, #tpu.memory_space<vmem>>, %arg4: memref<128x128xf32, #tpu.memory_space<vmem>>, %arg5: memref<1x128xf32, #tpu.memory_space<vmem>>, %arg6: memref<1x128xf32, #tpu.memory_space<vmem>>, %arg7: memref<1x128xf32, #tpu.memory_space<vmem>>, %arg8: memref<8x128xf32, #tpu.memory_space<vmem>>) attributes {dimension_semantics = [#tpu.dimension_semantics<parallel>], iteration_bounds = array<i64: 2>, scalar_prefetch = 0 : i64, scratch_operands = 0 : i64, tpu.core_type = #tpu.core_type<tc>, window_params = [{transform_indices = @transform_0, window_bounds = array<i64: 8, 128>}, {pipeline_mode = #tpu.pipeline_mode<synchronous>, transform_indices = @transform_1, window_bounds = array<i64: 128, 384>}, {pipeline_mode = #tpu.pipeline_mode<synchronous>, transform_indices = @transform_2, window_bounds = array<i64: 8, 8>}, {pipeline_mode = #tpu.pipeline_mode<synchronous>, transform_indices = @transform_3, window_bounds = array<i64: 128, 128>}, {pipeline_mode = #tpu.pipeline_mode<synchronous>, transform_indices = @transform_4, window_bounds = array<i64: 1, 128>}, {pipeline_mode = #tpu.pipeline_mode<synchronous>, transform_indices = @transform_5, window_bounds = array<i64: 1, 128>}, {pipeline_mode = #tpu.pipeline_mode<synchronous>, transform_indices = @transform_6, window_bounds = array<i64: 1, 128>}, {transform_indices = @transform_7, window_bounds = array<i64: 8, 128>}]} {
    %c0 = arith.constant 0 : index
    %c0_0 = arith.constant 0 : index
    %0 = vector.load %arg1[%c0, %c0_0] : memref<8x128xf32, #tpu.memory_space<vmem>>, vector<8x128xf32>
    %c0_1 = arith.constant 0 : index
    %c0_2 = arith.constant 0 : index
    %1 = vector.load %arg2[%c0_1, %c0_2] : memref<128x384xf32, #tpu.memory_space<vmem>>, vector<128x384xf32>
    %cst = arith.constant dense<0.000000e+00> : vector<8x384xf32>
    %2 = tpu.matmul %0, %1, %cst {dimension_numbers = #tpu.dot_dimension_numbers<[1], [0], [0], [1], [0, 0, 1, 1], [], []>} : vector<8x128xf32>, vector<128x384xf32>, vector<8x384xf32> -> vector<8x384xf32>
    %3 = vector.extract_strided_slice %2 {offsets = [0, 0], sizes = [8, 128], strides = [1, 1]} : vector<8x384xf32> to vector<8x128xf32>
    %4 = vector.extract_strided_slice %2 {offsets = [0, 128], sizes = [8, 128], strides = [1, 1]} : vector<8x384xf32> to vector<8x128xf32>
    %5 = vector.extract_strided_slice %2 {offsets = [0, 256], sizes = [8, 128], strides = [1, 1]} : vector<8x384xf32> to vector<8x128xf32>
    %cst_3 = arith.constant dense<0.000000e+00> : vector<8x8xf32>
    %6 = tpu.matmul %3, %4, %cst_3 {dimension_numbers = #tpu.dot_dimension_numbers<[1], [1], [0], [0], [0, 0, 1, 0], [], []>} : vector<8x128xf32>, vector<8x128xf32>, vector<8x8xf32> -> vector<8x8xf32>
    %c0_4 = arith.constant 0 : index
    %c0_5 = arith.constant 0 : index
    %7 = vector.load %arg3[%c0_4, %c0_5] : memref<8x8xf32, #tpu.memory_space<vmem>>, vector<8x8xf32>
    %8 = arith.addf %6, %7 : vector<8x8xf32>
    %cst_6 = arith.constant dense<0xFF800000> : vector<8xf32>
    %9 = vector.multi_reduction <maximumf>, %8, %cst_6 [1] : vector<8x8xf32> to vector<8xf32>
    %10 = vector.shape_cast %9 : vector<8xf32> to vector<8x1xf32>
    %11 = vector.broadcast %10 : vector<8x1xf32> to vector<8x8xf32>
    %12 = arith.subf %8, %11 : vector<8x8xf32>
    %13 = math.exp %12 : vector<8x8xf32>
    %cst_7 = arith.constant dense<0.000000e+00> : vector<8xf32>
    %14 = vector.multi_reduction <add>, %13, %cst_7 [1] : vector<8x8xf32> to vector<8xf32>
    %15 = vector.shape_cast %14 : vector<8xf32> to vector<8x1xf32>
    %16 = tpu.reciprocal %15 {approx = true} : vector<8x1xf32> -> vector<8x1xf32>
    %17 = arith.mulf %15, %16 : vector<8x1xf32>
    %cst_8 = arith.constant 2.000000e+00 : f32
    %18 = vector.broadcast %cst_8 : f32 to vector<8x1xf32>
    %19 = arith.subf %18, %17 : vector<8x1xf32>
    %20 = arith.mulf %16, %19 : vector<8x1xf32>
    %21 = vector.broadcast %20 : vector<8x1xf32> to vector<8x8xf32>
    %22 = arith.mulf %13, %21 : vector<8x8xf32>
    %cst_9 = arith.constant dense<0.000000e+00> : vector<8x128xf32>
    %23 = tpu.matmul %22, %5, %cst_9 {dimension_numbers = #tpu.dot_dimension_numbers<[1], [0], [0], [1], [0, 0, 1, 1], [], []>} : vector<8x8xf32>, vector<8x128xf32>, vector<8x128xf32> -> vector<8x128xf32>
    %c0_10 = arith.constant 0 : index
    %c0_11 = arith.constant 0 : index
    %24 = vector.load %arg4[%c0_10, %c0_11] : memref<128x128xf32, #tpu.memory_space<vmem>>, vector<128x128xf32>
    %cst_12 = arith.constant dense<0.000000e+00> : vector<8x128xf32>
    %25 = tpu.matmul %23, %24, %cst_12 {dimension_numbers = #tpu.dot_dimension_numbers<[1], [0], [0], [1], [0, 0, 1, 1], [], []>} : vector<8x128xf32>, vector<128x128xf32>, vector<8x128xf32> -> vector<8x128xf32>
    %c0_13 = arith.constant 0 : index
    %c0_14 = arith.constant 0 : index
    %26 = vector.load %arg5[%c0_13, %c0_14] : memref<1x128xf32, #tpu.memory_space<vmem>>, vector<1x128xf32>
    %27 = vector.broadcast %26 : vector<1x128xf32> to vector<8x128xf32>
    %28 = arith.addf %25, %27 : vector<8x128xf32>
    %c0_15 = arith.constant 0 : index
    %c0_16 = arith.constant 0 : index
    %29 = vector.load %arg6[%c0_15, %c0_16] : memref<1x128xf32, #tpu.memory_space<vmem>>, vector<1x128xf32>
    %c0_17 = arith.constant 0 : index
    %c0_18 = arith.constant 0 : index
    %30 = vector.load %arg7[%c0_17, %c0_18] : memref<1x128xf32, #tpu.memory_space<vmem>>, vector<1x128xf32>
    %cst_19 = arith.constant dense<0.000000e+00> : vector<8xf32>
    %31 = vector.multi_reduction <add>, %28, %cst_19 [1] : vector<8x128xf32> to vector<8xf32>
    %32 = vector.shape_cast %31 : vector<8xf32> to vector<8x1xf32>
    %cst_20 = arith.constant 3.125000e-02 : f32
    %33 = vector.broadcast %cst_20 : f32 to vector<8x1xf32>
    %34 = arith.mulf %32, %33 : vector<8x1xf32>
    %35 = vector.broadcast %34 : vector<8x1xf32> to vector<8x128xf32>
    %36 = arith.subf %28, %35 : vector<8x128xf32>
    %37 = tpu.iota {dimensions = array<i32: 1>} : vector<8x128xi32>
    %c32_i32 = arith.constant 32 : i32
    %38 = vector.broadcast %c32_i32 : i32 to vector<8x128xi32>
    %39 = arith.cmpi slt, %37, %38 : vector<8x128xi32>
    %cst_21 = arith.constant 0.000000e+00 : f32
    %40 = vector.broadcast %cst_21 : f32 to vector<8x128xf32>
    %41 = arith.select %39, %36, %40 : vector<8x128xi1>, vector<8x128xf32>
    %42 = arith.mulf %41, %41 : vector<8x128xf32>
    %cst_22 = arith.constant dense<0.000000e+00> : vector<8xf32>
    %43 = vector.multi_reduction <add>, %42, %cst_22 [1] : vector<8x128xf32> to vector<8xf32>
    %44 = vector.shape_cast %43 : vector<8xf32> to vector<8x1xf32>
    %cst_23 = arith.constant 3.125000e-02 : f32
    %45 = vector.broadcast %cst_23 : f32 to vector<8x1xf32>
    %46 = arith.mulf %44, %45 : vector<8x1xf32>
    %cst_24 = arith.constant 9.99999974E-6 : f32
    %47 = vector.broadcast %cst_24 : f32 to vector<8x1xf32>
    %48 = arith.addf %46, %47 : vector<8x1xf32>
    %49 = math.rsqrt %48 : vector<8x1xf32>
    %50 = vector.broadcast %49 : vector<8x1xf32> to vector<8x128xf32>
    %51 = arith.mulf %36, %50 : vector<8x128xf32>
    %52 = vector.broadcast %29 : vector<1x128xf32> to vector<8x128xf32>
    %53 = arith.mulf %51, %52 : vector<8x128xf32>
    %54 = vector.broadcast %30 : vector<1x128xf32> to vector<8x128xf32>
    %55 = arith.addf %53, %54 : vector<8x128xf32>
    %56 = arith.addf %55, %0 : vector<8x128xf32>
    %c0_25 = arith.constant 0 : index
    %c0_26 = arith.constant 0 : index
    %57 = vector.load %arg8[%c0_25, %c0_26] : memref<8x128xf32, #tpu.memory_space<vmem>>, vector<8x128xf32>
    tpu.vector_store %arg8[%c0_25, %c0_26], %56 {strides = array<i32>} : memref<8x128xf32, #tpu.memory_space<vmem>>, vector<8x128xf32>,
    return
  }
  func.func @transform_0(%arg0: i32) -> (i32, i32) {
    %c0_i32 = arith.constant 0 : i32
    %c0_i32_0 = arith.constant 0 : i32
    return %arg0, %c0_i32 : i32, i32
  }
  func.func @transform_1(%arg0: i32) -> (i32, i32) {
    %c0_i32 = arith.constant 0 : i32
    %c0_i32_0 = arith.constant 0 : i32
    %c0_i32_1 = arith.constant 0 : i32
    return %c0_i32, %c0_i32_0 : i32, i32
  }
  func.func @transform_2(%arg0: i32) -> (i32, i32) {
    %c0_i32 = arith.constant 0 : i32
    %c0_i32_0 = arith.constant 0 : i32
    %c0_i32_1 = arith.constant 0 : i32
    return %c0_i32, %c0_i32_0 : i32, i32
  }
  func.func @transform_3(%arg0: i32) -> (i32, i32) {
    %c0_i32 = arith.constant 0 : i32
    %c0_i32_0 = arith.constant 0 : i32
    %c0_i32_1 = arith.constant 0 : i32
    return %c0_i32, %c0_i32_0 : i32, i32
  }
  func.func @transform_4(%arg0: i32) -> (i32, i32) {
    %c0_i32 = arith.constant 0 : i32
    %c0_i32_0 = arith.constant 0 : i32
    %c0_i32_1 = arith.constant 0 : i32
    return %c0_i32, %c0_i32_0 : i32, i32
  }
  func.func @transform_5(%arg0: i32) -> (i32, i32) {
    %c0_i32 = arith.constant 0 : i32
    %c0_i32_0 = arith.constant 0 : i32
    %c0_i32_1 = arith.constant 0 : i32
    return %c0_i32, %c0_i32_0 : i32, i32
  }
  func.func @transform_6(%arg0: i32) -> (i32, i32) {
    %c0_i32 = arith.constant 0 : i32
    %c0_i32_0 = arith.constant 0 : i32
    %c0_i32_1 = arith.constant 0 : i32
    return %c0_i32, %c0_i32_0 : i32, i32
  }
  func.func @transform_7(%arg0: i32) -> (i32, i32) {
    %c0_i32 = arith.constant 0 : i32
    %c0_i32_0 = arith.constant 0 : i32
    return %arg0, %c0_i32 : i32, i32
  }
}

module attributes {stable_mosaic.version = 11 : i64} {
  func.func @_ffn_norm_kernel(%arg0: i32, %arg1: i32, %arg2: memref<8x128xf32, #tpu.memory_space<vmem>>, %arg3: memref<128x128xf32, #tpu.memory_space<vmem>>, %arg4: memref<1x128xf32, #tpu.memory_space<vmem>>, %arg5: memref<128x128xf32, #tpu.memory_space<vmem>>, %arg6: memref<1x128xf32, #tpu.memory_space<vmem>>, %arg7: memref<128x128xf32, #tpu.memory_space<vmem>>, %arg8: memref<1x128xf32, #tpu.memory_space<vmem>>, %arg9: memref<1x128xf32, #tpu.memory_space<vmem>>, %arg10: memref<1x128xf32, #tpu.memory_space<vmem>>, %arg11: memref<8x128xf32, #tpu.memory_space<vmem>>, %arg12: memref<8x128xf32, #tpu.memory_space<vmem>>) attributes {dimension_semantics = [#tpu.dimension_semantics<parallel>, #tpu.dimension_semantics<arbitrary>], iteration_bounds = array<i64: 2, 1>, scalar_prefetch = 0 : i64, scratch_operands = 1 : i64, tpu.core_type = #tpu.core_type<tc>, window_params = [{transform_indices = @transform_0, window_bounds = array<i64: 8, 128>}, {transform_indices = @transform_1, window_bounds = array<i64: 128, 128>}, {transform_indices = @transform_2, window_bounds = array<i64: 1, 128>}, {transform_indices = @transform_3, window_bounds = array<i64: 128, 128>}, {pipeline_mode = #tpu.pipeline_mode<synchronous>, transform_indices = @transform_4, window_bounds = array<i64: 1, 128>}, {pipeline_mode = #tpu.pipeline_mode<synchronous>, transform_indices = @transform_5, window_bounds = array<i64: 128, 128>}, {pipeline_mode = #tpu.pipeline_mode<synchronous>, transform_indices = @transform_6, window_bounds = array<i64: 1, 128>}, {pipeline_mode = #tpu.pipeline_mode<synchronous>, transform_indices = @transform_7, window_bounds = array<i64: 1, 128>}, {pipeline_mode = #tpu.pipeline_mode<synchronous>, transform_indices = @transform_8, window_bounds = array<i64: 1, 128>}, {transform_indices = @transform_9, window_bounds = array<i64: 8, 128>}]} {
    %c0_i32 = arith.constant 0 : i32
    %0 = arith.cmpi eq, %arg1, %c0_i32 : i32
    %1 = arith.extui %0 : i1 to i32
    %c0_i32_0 = arith.constant 0 : i32
    %2 = arith.cmpi ne, %1, %c0_i32_0 : i32
    scf.if %2 {
      %cst_16 = arith.constant 0.000000e+00 : f32
      %19 = vector.broadcast %cst_16 : f32 to vector<8x128xf32>
      %c0_17 = arith.constant 0 : index
      %c0_18 = arith.constant 0 : index
      %20 = vector.load %arg12[%c0_17, %c0_18] : memref<8x128xf32, #tpu.memory_space<vmem>>, vector<8x128xf32>
      tpu.vector_store %arg12[%c0_17, %c0_18], %19 {strides = array<i32>} : memref<8x128xf32, #tpu.memory_space<vmem>>, vector<8x128xf32>,
    } else {
    }
    %c0 = arith.constant 0 : index
    %c0_1 = arith.constant 0 : index
    %3 = vector.load %arg2[%c0, %c0_1] : memref<8x128xf32, #tpu.memory_space<vmem>>, vector<8x128xf32>
    %c0_2 = arith.constant 0 : index
    %c0_3 = arith.constant 0 : index
    %4 = vector.load %arg3[%c0_2, %c0_3] : memref<128x128xf32, #tpu.memory_space<vmem>>, vector<128x128xf32>
    %cst = arith.constant dense<0.000000e+00> : vector<8x128xf32>
    %5 = tpu.matmul %3, %4, %cst {dimension_numbers = #tpu.dot_dimension_numbers<[1], [0], [0], [1], [0, 0, 1, 1], [], []>} : vector<8x128xf32>, vector<128x128xf32>, vector<8x128xf32> -> vector<8x128xf32>
    %c0_4 = arith.constant 0 : index
    %c0_5 = arith.constant 0 : index
    %6 = vector.load %arg4[%c0_4, %c0_5] : memref<1x128xf32, #tpu.memory_space<vmem>>, vector<1x128xf32>
    %7 = vector.broadcast %6 : vector<1x128xf32> to vector<8x128xf32>
    %8 = arith.addf %5, %7 : vector<8x128xf32>
    %cst_6 = arith.constant 0.000000e+00 : f32
    %9 = vector.broadcast %cst_6 : f32 to vector<8x128xf32>
    %10 = arith.maximumf %8, %9 : vector<8x128xf32>
    %c0_7 = arith.constant 0 : index
    %c0_8 = arith.constant 0 : index
    %11 = vector.load %arg12[%c0_7, %c0_8] : memref<8x128xf32, #tpu.memory_space<vmem>>, vector<8x128xf32>
    %c0_9 = arith.constant 0 : index
    %c0_10 = arith.constant 0 : index
    %12 = vector.load %arg5[%c0_9, %c0_10] : memref<128x128xf32, #tpu.memory_space<vmem>>, vector<128x128xf32>
    %cst_11 = arith.constant dense<0.000000e+00> : vector<8x128xf32>
    %13 = tpu.matmul %10, %12, %cst_11 {dimension_numbers = #tpu.dot_dimension_numbers<[1], [0], [0], [1], [0, 0, 1, 1], [], []>} : vector<8x128xf32>, vector<128x128xf32>, vector<8x128xf32> -> vector<8x128xf32>
    %14 = arith.addf %11, %13 : vector<8x128xf32>
    %c0_12 = arith.constant 0 : index
    %c0_13 = arith.constant 0 : index
    %15 = vector.load %arg12[%c0_12, %c0_13] : memref<8x128xf32, #tpu.memory_space<vmem>>, vector<8x128xf32>
    tpu.vector_store %arg12[%c0_12, %c0_13], %14 {strides = array<i32>} : memref<8x128xf32, #tpu.memory_space<vmem>>, vector<8x128xf32>,
    %c0_i32_14 = arith.constant 0 : i32
    %16 = arith.cmpi eq, %arg1, %c0_i32_14 : i32
    %17 = arith.extui %16 : i1 to i32
    %c0_i32_15 = arith.constant 0 : i32
    %18 = arith.cmpi ne, %17, %c0_i32_15 : i32
    scf.if %18 {
      %c0_16 = arith.constant 0 : index
      %c0_17 = arith.constant 0 : index
      %19 = vector.load %arg12[%c0_16, %c0_17] : memref<8x128xf32, #tpu.memory_space<vmem>>, vector<8x128xf32>
      %c0_18 = arith.constant 0 : index
      %c0_19 = arith.constant 0 : index
      %20 = vector.load %arg6[%c0_18, %c0_19] : memref<1x128xf32, #tpu.memory_space<vmem>>, vector<1x128xf32>
      %21 = vector.broadcast %20 : vector<1x128xf32> to vector<8x128xf32>
      %22 = arith.addf %19, %21 : vector<8x128xf32>
      %c0_20 = arith.constant 0 : index
      %c0_21 = arith.constant 0 : index
      %23 = vector.load %arg7[%c0_20, %c0_21] : memref<128x128xf32, #tpu.memory_space<vmem>>, vector<128x128xf32>
      %cst_22 = arith.constant dense<0.000000e+00> : vector<8x128xf32>
      %24 = tpu.matmul %22, %23, %cst_22 {dimension_numbers = #tpu.dot_dimension_numbers<[1], [0], [0], [1], [0, 0, 1, 1], [], []>} : vector<8x128xf32>, vector<128x128xf32>, vector<8x128xf32> -> vector<8x128xf32>
      %c0_23 = arith.constant 0 : index
      %c0_24 = arith.constant 0 : index
      %25 = vector.load %arg8[%c0_23, %c0_24] : memref<1x128xf32, #tpu.memory_space<vmem>>, vector<1x128xf32>
      %26 = vector.broadcast %25 : vector<1x128xf32> to vector<8x128xf32>
      %27 = arith.addf %24, %26 : vector<8x128xf32>
      %c0_25 = arith.constant 0 : index
      %c0_26 = arith.constant 0 : index
      %28 = vector.load %arg9[%c0_25, %c0_26] : memref<1x128xf32, #tpu.memory_space<vmem>>, vector<1x128xf32>
      %c0_27 = arith.constant 0 : index
      %c0_28 = arith.constant 0 : index
      %29 = vector.load %arg10[%c0_27, %c0_28] : memref<1x128xf32, #tpu.memory_space<vmem>>, vector<1x128xf32>
      %cst_29 = arith.constant dense<0.000000e+00> : vector<8xf32>
      %30 = vector.multi_reduction <add>, %27, %cst_29 [1] : vector<8x128xf32> to vector<8xf32>
      %31 = vector.shape_cast %30 : vector<8xf32> to vector<8x1xf32>
      %cst_30 = arith.constant 3.125000e-02 : f32
      %32 = vector.broadcast %cst_30 : f32 to vector<8x1xf32>
      %33 = arith.mulf %31, %32 : vector<8x1xf32>
      %34 = vector.broadcast %33 : vector<8x1xf32> to vector<8x128xf32>
      %35 = arith.subf %27, %34 : vector<8x128xf32>
      %36 = tpu.iota {dimensions = array<i32: 1>} : vector<8x128xi32>
      %c32_i32 = arith.constant 32 : i32
      %37 = vector.broadcast %c32_i32 : i32 to vector<8x128xi32>
      %38 = arith.cmpi slt, %36, %37 : vector<8x128xi32>
      %cst_31 = arith.constant 0.000000e+00 : f32
      %39 = vector.broadcast %cst_31 : f32 to vector<8x128xf32>
      %40 = arith.select %38, %35, %39 : vector<8x128xi1>, vector<8x128xf32>
      %41 = arith.mulf %40, %40 : vector<8x128xf32>
      %cst_32 = arith.constant dense<0.000000e+00> : vector<8xf32>
      %42 = vector.multi_reduction <add>, %41, %cst_32 [1] : vector<8x128xf32> to vector<8xf32>
      %43 = vector.shape_cast %42 : vector<8xf32> to vector<8x1xf32>
      %cst_33 = arith.constant 3.125000e-02 : f32
      %44 = vector.broadcast %cst_33 : f32 to vector<8x1xf32>
      %45 = arith.mulf %43, %44 : vector<8x1xf32>
      %cst_34 = arith.constant 9.99999974E-6 : f32
      %46 = vector.broadcast %cst_34 : f32 to vector<8x1xf32>
      %47 = arith.addf %45, %46 : vector<8x1xf32>
      %48 = math.rsqrt %47 : vector<8x1xf32>
      %49 = vector.broadcast %48 : vector<8x1xf32> to vector<8x128xf32>
      %50 = arith.mulf %35, %49 : vector<8x128xf32>
      %51 = vector.broadcast %28 : vector<1x128xf32> to vector<8x128xf32>
      %52 = arith.mulf %50, %51 : vector<8x128xf32>
      %53 = vector.broadcast %29 : vector<1x128xf32> to vector<8x128xf32>
      %54 = arith.addf %52, %53 : vector<8x128xf32>
      %55 = arith.addf %54, %3 : vector<8x128xf32>
      %c0_35 = arith.constant 0 : index
      %c0_36 = arith.constant 0 : index
      %56 = vector.load %arg11[%c0_35, %c0_36] : memref<8x128xf32, #tpu.memory_space<vmem>>, vector<8x128xf32>
      tpu.vector_store %arg11[%c0_35, %c0_36], %55 {strides = array<i32>} : memref<8x128xf32, #tpu.memory_space<vmem>>, vector<8x128xf32>,
    } else {
    }
    return
  }
  func.func @transform_0(%arg0: i32, %arg1: i32) -> (i32, i32) {
    %c0_i32 = arith.constant 0 : i32
    %c0_i32_0 = arith.constant 0 : i32
    return %arg0, %c0_i32 : i32, i32
  }
  func.func @transform_1(%arg0: i32, %arg1: i32) -> (i32, i32) {
    %c0_i32 = arith.constant 0 : i32
    %c0_i32_0 = arith.constant 0 : i32
    return %c0_i32, %arg1 : i32, i32
  }
  func.func @transform_2(%arg0: i32, %arg1: i32) -> (i32, i32) {
    %c0_i32 = arith.constant 0 : i32
    %c0_i32_0 = arith.constant 0 : i32
    return %c0_i32, %arg1 : i32, i32
  }
  func.func @transform_3(%arg0: i32, %arg1: i32) -> (i32, i32) {
    %c0_i32 = arith.constant 0 : i32
    %c0_i32_0 = arith.constant 0 : i32
    return %arg1, %c0_i32 : i32, i32
  }
  func.func @transform_4(%arg0: i32, %arg1: i32) -> (i32, i32) {
    %c0_i32 = arith.constant 0 : i32
    %c0_i32_0 = arith.constant 0 : i32
    %c0_i32_1 = arith.constant 0 : i32
    return %c0_i32, %c0_i32_0 : i32, i32
  }
  func.func @transform_5(%arg0: i32, %arg1: i32) -> (i32, i32) {
    %c0_i32 = arith.constant 0 : i32
    %c0_i32_0 = arith.constant 0 : i32
    %c0_i32_1 = arith.constant 0 : i32
    return %c0_i32, %c0_i32_0 : i32, i32
  }
  func.func @transform_6(%arg0: i32, %arg1: i32) -> (i32, i32) {
    %c0_i32 = arith.constant 0 : i32
    %c0_i32_0 = arith.constant 0 : i32
    %c0_i32_1 = arith.constant 0 : i32
    return %c0_i32, %c0_i32_0 : i32, i32
  }
  func.func @transform_7(%arg0: i32, %arg1: i32) -> (i32, i32) {
    %c0_i32 = arith.constant 0 : i32
    %c0_i32_0 = arith.constant 0 : i32
    %c0_i32_1 = arith.constant 0 : i32
    return %c0_i32, %c0_i32_0 : i32, i32
  }
  func.func @transform_8(%arg0: i32, %arg1: i32) -> (i32, i32) {
    %c0_i32 = arith.constant 0 : i32
    %c0_i32_0 = arith.constant 0 : i32
    %c0_i32_1 = arith.constant 0 : i32
    return %c0_i32, %c0_i32_0 : i32, i32
  }
  func.func @transform_9(%arg0: i32, %arg1: i32) -> (i32, i32) {
    %c0_i32 = arith.constant 0 : i32
    %c0_i32_0 = arith.constant 0 : i32
    return %arg0, %c0_i32 : i32, i32
  }
}

</mosaic_0001>

<bundles_post_ra>
// kernel: eq.8
= control target key start
LH: loop header
LB: loop body
LE: loop exit
PB: predicated region body
PF: predicated region fallthrough
CT: control target
= control target key end

     0   :  { %vm8_vm0 = vcmask 31744   ;;  %vm14_vm1 = vcmask 64544   ;;  %s42_s0 = inlined_call_operand.vmem [shape: s32[2,4], index: 0, kind: input, shape index: {}]   ;;  %s43_s1 = inlined_call_operand.vmem [shape: s32[8], index: 1, kind: output, shape index: {}]  }
   0x1   :  { %v5_v0 = vld [vmem:[%s42_s0] sm:$0x3]  ;;  %s25_s0 = smov 4  }
   0x2   :  { %6 = vst [vmem:[#allocation1] sm:$0x3] %v5_v0 }
   0x9   :  { %v11_v1 = vld [vmem:[#allocation1 + $0x1] sm:$0x1]   ;;  %v7_v2 = vld [vmem:[#allocation1] sm:$0x1]  }
   0xa   :  { %12 = vrot.lane.b32.xlu0 %v11_v1, %s25_s0  ;;  %9 = vst.msk [vmem:[#allocation0] sm:$0x1] %vm8_vm0, %v7_v2  }
  0x7c   :  { %v13_v3 = vpop.permute.xlu0 %12  }
  0x7d   :  { %15 = vst.msk [vmem:[#allocation0] sm:$0x1] %vm14_vm1, %v13_v3  }
  0x84   :  { %v20_v4 = vld [vmem:[#allocation0] sm:$0x1] }
  0x85   :  { %23 = vst [vmem:[%s43_s1] sm:$0x1] %v20_v4 }

// kernel: block_forward.3
= control target key start
LH: loop header
LB: loop body
LE: loop exit
PB: predicated region body
PF: predicated region fallthrough
CT: control target
= control target key end

     0   :  { %s1101_s30 = smov 0   ;;  %s1103_s10 = smov 0   ;;  %s1362_s0 = inlined_call_operand.vmem [shape: f32[16,128], index: 0, kind: input, shape index: {}]   ;;  %s1363_s1 = inlined_call_operand.vmem [shape: f32[128,128], index: 1, kind: input, shape index: {}]   ;;  %s1364_s2 = inlined_call_operand.vmem [shape: f32[1,128], index: 2, kind: input, shape index: {}]   ;;  %s1365_s3 = inlined_call_operand.vmem [shape: f32[128,128], index: 3, kind: input, shape index: {}]   ;;  %s1366_s4 = inlined_call_operand.vmem [shape: f32[1,128], index: 4, kind: input, shape index: {}]   ;;  %s1367_s5 = inlined_call_operand.vmem [shape: f32[128,128], index: 5, kind: input, shape index: {}]   ;;  %s1368_s6 = inlined_call_operand.vmem [shape: f32[1,128], index: 6, kind: input, shape index: {}]   ;;  %s1369_s7 = inlined_call_operand.vmem [shape: f32[1,128], index: 7, kind: input, shape index: {}]   ;;  %s1370_s8 = inlined_call_operand.vmem [shape: f32[1,128], index: 8, kind: input, shape index: {}]   ;;  %s1371_s9 = inlined_call_operand.vmem [shape: f32[16,128], index: 9, kind: output, shape index: {}]  }
   0x1   :  { %s1105_s11 = smov 0  }
   0x2 LB: > { %s31_s12 = sadd.s32 1, %s1043_s10  ;;  %p831_p0 = scmp.ge.s32.totalorder %s1047_s11, 1  ;;  %s1047_s11 = sphi %s1105_s11, %s19_s11   ;;  %s1043_s10 = sphi %s1103_s10, %s1373_s10   ;;  %s1039_s30 = sphi %s1101_s30, %s1372_s30  }
   0x3   : > { %p33_p1 = scmp.ge.s32.totalorder %s31_s12, 2  ;;  %p326_p2 = scmp.lt.s32.totalorder %s1047_s11, 3 }
   0x5   : > { %s1375_s12 = smov (%p33_p1, %s31_s12), 0  ;;  %p327_p3 = pnand %p831_p0, %p326_p2 }
   0x6   : > { %p372_p4 = scmp.lt.s32.totalorder (!%p327_p3), %s1039_s30, 1 }
   0x7   : > { %330 = sbr.rel (%p327_p3) target bundleno = 942 (0x3ae), region = 56 }
   0xc   : > { %v414_v0 = vld [vmem:[%s1363_s1 + $0x78] sm:$0xff]  ;;  %v1049_v1 = vmov 0.0   ;;  %v413_v2 = vld [vmem:[%s1363_s1 + $0x70] sm:$0xff]  ;;  %vm1050_vm0 = vmmov 0   ;;  %v412_v3 = vld [vmem:[%s1363_s1 + $0x68] sm:$0xff]  ;;  %s1377_s30 = smov (!%p372_p4, %s1039_s30), 1  ;;  %v693_v63 = vlaneseq }
   0xd   : > { %892 = vmatprep.subr.mxu0 %v1049_v1  ;;  %924 = vmatprep.mubr.msk.f32.mxu0 %vm1050_vm0, %v1049_v1  ;;  %v411_v4 = vld [vmem:[%s1363_s1 + $0x60] sm:$0xff]  ;;  %v509_v5 = vld [vmem:[%s1365_s3 + $0x78] sm:$0xff]  ;;  %v508_v6 = vld [vmem:[%s1365_s3 + $0x70] sm:$0xff]  ;;  %s832_s27 = sshll.u32 %s1377_s30, 3 }
   0xe   : > { %893 = vmatpush3.msra.mxu0 %v414_v0  ;;  %927 = vmatprep.subr.mxu1 %v1049_v1  ;;  %v410_v7 = vld [vmem:[%s1363_s1 + $0x58] sm:$0xff]  ;;  %v507_v8 = vld [vmem:[%s1365_s3 + $0x68] sm:$0xff]  ;;  %v409_v9 = vld [vmem:[%s1363_s1 + $0x50] sm:$0xff]  ;;  %s375_s19 = scalar_lea.vmem %s1362_s0, %s832_s27  ;;  %v694_v0 = vand.u32 127, %v693_v63  ;;  %s392_s26 = scalar_lea.vmem %s1371_s9, %s832_s27 }
   0xf   : > { %894 = vmatprep.subr.mxu0 %v1049_v1  ;;  %959 = vmatprep.mubr.msk.f32.mxu1 %vm1050_vm0, %v1049_v1  ;;  %v506_v10 = vld [vmem:[%s1365_s3 + $0x60] sm:$0xff]  ;;  %v408_v11 = vld [vmem:[%s1363_s1 + $0x48] sm:$0xff]  ;;  %v505_v12 = vld [vmem:[%s1365_s3 + $0x58] sm:$0xff] }
  0x10   : > { %895 = vmatpush3.msra.mxu0 %v413_v2  ;;  %928 = vmatpush3.msra.mxu1 %v509_v5  ;;  %v407_v13 = vld [vmem:[%s1363_s1 + $0x40] sm:$0xff]  ;;  %v504_v14 = vld [vmem:[%s1365_s3 + $0x50] sm:$0xff]  ;;  %v406_v15 = vld [vmem:[%s1363_s1 + $0x38] sm:$0xff]  ;;  %vm695_vm1 = vcmp.lt.s32.totalorder %v694_v0, 32 }
  0x11   : > { %896 = vmatprep.subr.mxu0 %v1049_v1  ;;  %929 = vmatprep.subr.mxu1 %v1049_v1  ;;  %v503_v16 = vld [vmem:[%s1365_s3 + $0x48] sm:$0xff]  ;;  %v405_v17 = vld [vmem:[%s1363_s1 + $0x30] sm:$0xff]  ;;  %v502_v18 = vld [vmem:[%s1365_s3 + $0x40] sm:$0xff] }
  0x12   : > { %897 = vmatpush3.msra.mxu0 %v412_v3  ;;  %930 = vmatpush3.msra.mxu1 %v508_v6  ;;  %v404_v19 = vld [vmem:[%s1363_s1 + $0x28] sm:$0xff]  ;;  %v501_v20 = vld [vmem:[%s1365_s3 + $0x38] sm:$0xff]  ;;  %v403_v21 = vld [vmem:[%s1363_s1 + $0x20] sm:$0xff] }
  0x13   : > { %898 = vmatprep.subr.mxu0 %v1049_v1  ;;  %931 = vmatprep.subr.mxu1 %v1049_v1  ;;  %v500_v22 = vld [vmem:[%s1365_s3 + $0x30] sm:$0xff]  ;;  %v402_v23 = vld [vmem:[%s1363_s1 + $0x18] sm:$0xff]  ;;  %v499_v24 = vld [vmem:[%s1365_s3 + $0x28] sm:$0xff] }
  0x14   : > { %899 = vmatpush3.msra.mxu0 %v411_v4  ;;  %932 = vmatpush3.msra.mxu1 %v507_v8  ;;  %v401_v25 = vld [vmem:[%s1363_s1 + $0x10] sm:$0xff]  ;;  %v498_v26 = vld [vmem:[%s1365_s3 + $0x20] sm:$0xff]  ;;  %v400_v27 = vld [vmem:[%s1363_s1 + $0x8] sm:$0xff] }
  0x15   : > { %900 = vmatprep.subr.mxu0 %v1049_v1  ;;  %933 = vmatprep.subr.mxu1 %v1049_v1  ;;  %v497_v28 = vld [vmem:[%s1365_s3 + $0x18] sm:$0xff]  ;;  %v399_v29 = vld [vmem:[%s1363_s1] sm:$0xff]  ;;  %v496_v31 = vld [vmem:[%s1365_s3 + $0x10] sm:$0xff] }
  0x16   : > { %901 = vmatpush3.msra.mxu0 %v410_v7  ;;  %934 = vmatpush3.msra.mxu1 %v506_v10  ;;  %v1250_v30 = vld [vmem:[%s375_s19] sm:$0xff]  ;;  %v495_v32 = vld [vmem:[%s1365_s3 + $0x8] sm:$0xff]  ;;  %v609_v34 = vld [vmem:[%s1367_s5 + $0x78] sm:$0xff] }
  0x17   : > { %902 = vmatprep.subr.mxu0 %v1049_v1  ;;  %935 = vmatprep.subr.mxu1 %v1049_v1  ;;  %v494_v33 = vld [vmem:[%s1365_s3] sm:$0xff]  ;;  %v608_v35 = vld [vmem:[%s1367_s5 + $0x70] sm:$0xff]  ;;  %v607_v36 = vld [vmem:[%s1367_s5 + $0x68] sm:$0xff] }
  0x18   : > { %903 = vmatpush3.msra.mxu0 %v409_v9  ;;  %936 = vmatpush3.msra.mxu1 %v505_v12  ;;  %v606_v37 = vld [vmem:[%s1367_s5 + $0x60] sm:$0xff]  ;;  %v605_v38 = vld [vmem:[%s1367_s5 + $0x58] sm:$0xff]  ;;  %v604_v39 = vld [vmem:[%s1367_s5 + $0x50] sm:$0xff] }
  0x19   : > { %904 = vmatprep.subr.mxu0 %v1049_v1  ;;  %937 = vmatprep.subr.mxu1 %v1049_v1  ;;  %v603_v40 = vld [vmem:[%s1367_s5 + $0x48] sm:$0xff]  ;;  %v602_v41 = vld [vmem:[%s1367_s5 + $0x40] sm:$0xff]  ;;  %v601_v42 = vld [vmem:[%s1367_s5 + $0x38] sm:$0xff] }
  0x1a   : > { %905 = vmatpush3.msra.mxu0 %v408_v11  ;;  %938 = vmatpush3.msra.mxu1 %v504_v14  ;;  %v600_v43 = vld [vmem:[%s1367_s5 + $0x30] sm:$0xff]  ;;  %v599_v44 = vld [vmem:[%s1367_s5 + $0x28] sm:$0xff]  ;;  %v598_v45 = vld [vmem:[%s1367_s5 + $0x20] sm:$0xff] }
  0x1b   : > { %906 = vmatprep.subr.mxu0 %v1049_v1  ;;  %939 = vmatprep.subr.mxu1 %v1049_v1  ;;  %v597_v46 = vld [vmem:[%s1367_s5 + $0x18] sm:$0xff]  ;;  %v596_v47 = vld [vmem:[%s1367_s5 + $0x10] sm:$0xff]  ;;  %v834_v48 = vld [vmem:[%s1364_s2] ss:$0 sm:$0xff] }
  0x1c   : > { %907 = vmatpush3.msra.mxu0 %v407_v13  ;;  %940 = vmatpush3.msra.mxu1 %v503_v16  ;;  %v595_v53 = vld [vmem:[%s1367_s5 + $0x8] sm:$0xff]  ;;  %v594_v54 = vld [vmem:[%s1367_s5] sm:$0xff] }
  0x1d   : > { %908 = vmatprep.subr.mxu0 %v1049_v1  ;;  %941 = vmatprep.subr.mxu1 %v1049_v1  ;;  %v835_v55 = vld [vmem:[%s1366_s4] ss:$0 sm:$0xff] }
  0x1e   : > { %909 = vmatpush3.msra.mxu0 %v406_v15  ;;  %942 = vmatpush3.msra.mxu1 %v502_v18  ;;  %v836_v59 = vld [vmem:[%s1368_s6] ss:$0 sm:$0xff] }
  0x1f   : > { %910 = vmatprep.subr.mxu0 %v1049_v1  ;;  %943 = vmatprep.subr.mxu1 %v1049_v1  ;;  %v837_v10 = vld [vmem:[%s1369_s7] ss:$0 sm:$0xff] }
  0x20   : > { %911 = vmatpush3.msra.mxu0 %v405_v17  ;;  %944 = vmatpush3.msra.mxu1 %v501_v20  ;;  %v838_v12 = vld [vmem:[%s1370_s8] ss:$0 sm:$0xff] }
  0x21   : > { %912 = vmatprep.subr.mxu0 %v1049_v1  ;;  %945 = vmatprep.subr.mxu1 %v1049_v1 }
  0x22   : > { %913 = vmatpush3.msra.mxu0 %v404_v19  ;;  %946 = vmatpush3.msra.mxu1 %v500_v22 }
  0x23   : > { %914 = vmatprep.subr.mxu0 %v1049_v1  ;;  %947 = vmatprep.subr.mxu1 %v1049_v1 }
  0x24   : > { %915 = vmatpush3.msra.mxu0 %v403_v21  ;;  %948 = vmatpush3.msra.mxu1 %v499_v24 }
  0x25   : > { %916 = vmatprep.subr.mxu0 %v1049_v1  ;;  %949 = vmatprep.subr.mxu1 %v1049_v1 }
  0x26   : > { %917 = vmatpush3.msra.mxu0 %v402_v23  ;;  %950 = vmatpush3.msra.mxu1 %v498_v26 }
  0x27   : > { %918 = vmatprep.subr.mxu0 %v1049_v1  ;;  %951 = vmatprep.subr.mxu1 %v1049_v1 }
  0x28   : > { %919 = vmatpush3.msra.mxu0 %v401_v25  ;;  %952 = vmatpush3.msra.mxu1 %v497_v28 }
  0x29   : > { %920 = vmatprep.subr.mxu0 %v1049_v1  ;;  %953 = vmatprep.subr.mxu1 %v1049_v1 }
  0x2a   : > { %921 = vmatpush3.msra.mxu0 %v400_v27  ;;  %954 = vmatpush3.msra.mxu1 %v496_v31 }
  0x2b   : > { %922 = vmatprep.subr.mxu0 %v1049_v1  ;;  %955 = vmatprep.subr.mxu1 %v1049_v1 }
  0x2c   : > { %923 = vmatpush3.msra.mxu0 %v399_v29  ;;  %956 = vmatpush3.msra.mxu1 %v495_v32 }
  0x2d   : > { %925 = vmatmul.mubr.f32.vlgmr.msra.gmra.mxu0 %v1250_v30  ;;  %962 = vmatprep.subr.mxu0 %v1049_v1 }
  0x2e   : > { %994 = vmatprep.mubr.msk.f32.mxu0 %vm1050_vm0, %v1049_v1  ;;  %957 = vmatprep.subr.mxu1 %v1049_v1 }
  0x2f   : > { %958 = vmatpush3.msra.mxu1 %v494_v33  ;;  %963 = vmatpush3.msra.mxu0 %v609_v34 }
  0x30   : > { %964 = vmatprep.subr.mxu0 %v1049_v1 }
  0x31   : > { %965 = vmatpush3.msra.mxu0 %v608_v35 }
  0x32   : > { %966 = vmatprep.subr.mxu0 %v1049_v1 }
  0x33   : > { %967 = vmatpush3.msra.mxu0 %v607_v36 }
  0x34   : > { %968 = vmatprep.subr.mxu0 %v1049_v1 }
  0x35   : > { %969 = vmatpush3.msra.mxu0 %v606_v37 }
  0x36   : > { %970 = vmatprep.subr.mxu0 %v1049_v1 }
  0x37   : > { %971 = vmatpush3.msra.mxu0 %v605_v38 }
  0x38   : > { %972 = vmatprep.subr.mxu0 %v1049_v1 }
  0x39   : > { %973 = vmatpush3.msra.mxu0 %v604_v39 }
  0x3a   : > { %974 = vmatprep.subr.mxu0 %v1049_v1 }
  0x3b   : > { %975 = vmatpush3.msra.mxu0 %v603_v40 }
  0x3c   : > { %976 = vmatprep.subr.mxu0 %v1049_v1 }
  0x3d   : > { %977 = vmatpush3.msra.mxu0 %v602_v41 }
  0x3e   : > { %978 = vmatprep.subr.mxu0 %v1049_v1 }
  0x3f   : > { %979 = vmatpush3.msra.mxu0 %v601_v42 }
  0x40   : > { %980 = vmatprep.subr.mxu0 %v1049_v1 }
  0x41   : > { %981 = vmatpush3.msra.mxu0 %v600_v43 }
  0x42   : > { %982 = vmatprep.subr.mxu0 %v1049_v1 }
  0x43   : > { %983 = vmatpush3.msra.mxu0 %v599_v44 }
  0x44   : > { %984 = vmatprep.subr.mxu0 %v1049_v1 }
  0x45   : > { %985 = vmatpush3.msra.mxu0 %v598_v45 }
  0x46   : > { %986 = vmatprep.subr.mxu0 %v1049_v1 }
  0x47   : > { %987 = vmatpush3.msra.mxu0 %v597_v46 }
  0x48   : > { %988 = vmatprep.subr.mxu0 %v1049_v1 }
  0x49   : > { %989 = vmatpush3.msra.mxu0 %v596_v47 }
  0x4a   : > { %990 = vmatprep.subr.mxu0 %v1049_v1 }
  0x4b   : > { %991 = vmatpush3.msra.mxu0 %v595_v53 }
  0x4c   : > { %992 = vmatprep.subr.mxu0 %v1049_v1 }
  0x4d   : > { %993 = vmatpush3.msra.mxu0 %v594_v54 }
  0xed   : > { %v488_v49 = vpop.f32.mrf.mxu0 }
  0xee   : > { %v489_v50 = vadd.f32 %v834_v48, %v488_v49 }
  0xef   : > { %v926_v51 = vpop.f32.mrf.mxu0 }
  0xf0   : > { %v492_v52 = vmax.f32 %v489_v50, 0.0 }
  0xf2   : > { %960 = vmatmul.mubr.f32.vlgmr.msra.gmra.mxu1 %v492_v52 }
 0x1b2   : > { %v576_v56 = vpop.f32.mrf.mxu1 }
 0x1b3   : > { %v593_v57 = vadd.f32 %v835_v55, %v576_v56 }
 0x1b4   : > { %v961_v58 = vpop.f32.mrf.mxu1 }
 0x1b5   : > { %995 = vmatmul.mubr.f32.vlgmr.msra.gmra.mxu0 %v593_v57 }
 0x275   : > { %v683_v60 = vpop.f32.mrf.mxu0 }
 0x276   : > { %v684_v61 = vadd.f32 %v836_v59, %v683_v60 }
 0x277   : > { %v996_v62 = vpop.f32.mrf.mxu0 }
 0x278   : > { %689 = vadd.xlane.f32.xlu0 %v684_v61 }
 0x301   : > { %v690_v1 = vpop.xlane.xlu0 %689 }
 0x302   : > { %v691_v2 = vmul.f32 0.03125, %v690_v1 }
 0x304   : > { %v692_v3 = vsub.f32 %v684_v61, %v691_v2 }
 0x306   : > { %v696_v4 = vsel %vm695_vm1, %v692_v3, 0.0 }
 0x307   : > { %v697_v5 = vmul.f32 %v696_v4, %v696_v4 }
 0x309   : > { %698 = vadd.xlane.f32.xlu0 %v697_v5 }
 0x392   : > { %v699_v6 = vpop.xlane.xlu0 %698 }
 0x393   : > { %v700_v7 = vmul.f32 0.03125, %v699_v6 }
 0x395   : > { %v701_v8 = vadd.f32 1e-05, %v700_v7 }
 0x397   : > { %1023 = vrsqrt.f32 %v701_v8 }
 0x3a4   : > { %v1024_v9 = vpop.eup %1023 }
 0x3a5   : > { %v703_v11 = vmul.f32 %v1024_v9, %v692_v3 }
 0x3a7   : > { %v710_v13 = vmul.f32 %v837_v10, %v703_v11 }
 0x3a9   : > { %v717_v14 = vadd.f32 %v838_v12, %v710_v13 }
 0x3ab   : > { %v718_v15 = vadd.f32 %v717_v14, %v1250_v30 }
 0x3ad   : > { %719 = vst [vmem:[%s392_s26] sm:$0xff] %v718_v15 }
 0x3ae PF: > { %s19_s11 = sadd.s32 1, %s1047_s11   ;;  %s1372_s30 = smov %s1043_s10 }
 0x3af   : > { %p16_p5 = scmp.ge.s32.totalorder %s19_s11, 4   ;;  %s1373_s10 = smov %s1375_s12 }
 0x3b1   :  { %18 = sbr.rel (!%p16_p5) target bundleno = 2 (0x2), region = 103 }

// kernel: block_forward.2
= control target key start
LH: loop header
LB: loop body
LE: loop exit
PB: predicated region body
PF: predicated region fallthrough
CT: control target
= control target key end

     0   :  { %12 = vsyncpa [#allocation3], 0  ;;  %s1276_s0 = inlined_call_operand.vmem [shape: f32[16,128], index: 0, kind: input, shape index: {}]   ;;  %s1277_s1 = inlined_call_operand.hbm [shape: f32[128,384], index: 1, kind: input, shape index: {}]   ;;  %s1278_s2 = inlined_call_operand.vmem [shape: f32[8,8], index: 2, kind: input, shape index: {}]   ;;  %s1279_s3 = inlined_call_operand.hbm [shape: f32[128,128], index: 3, kind: input, shape index: {}]   ;;  %s1280_s4 = inlined_call_operand.vmem [shape: f32[1,128], index: 4, kind: input, shape index: {}]   ;;  %s1281_s5 = inlined_call_operand.vmem [shape: f32[1,128], index: 5, kind: input, shape index: {}]   ;;  %s1282_s6 = inlined_call_operand.vmem [shape: f32[1,128], index: 6, kind: input, shape index: {}]   ;;  %s1283_s7 = inlined_call_operand.vmem [shape: f32[16,128], index: 7, kind: output, shape index: {}]  }
   0x1   :  { %13 = vsyncpa [#allocation5], 0  ;;  %s1146_s24 = smov 0  }
   0x2 LB: > { %s1098_s25 = smov [#allocation2]   ;;  %s1152_s27 = sadd.s32 4294967295, %s1096_s24   ;;  %s1096_s24 = sphi %s1146_s24, %s19_s24  }
   0x3   : > { %s214_s26 = sshll.u32 %s1098_s25, 4  ;;  %p856_p0 = scmp.ge.s32.totalorder %s1096_s24, 1  ;;  %s215_s26 = int_to_ptr.vmem [resolvable:$true] %s214_s26 }
   0x4   : > { %p202_p1 = scmp.lt.s32.totalorder %s1096_s24, 3  ;;  %p1004_p3 = scmp.eq.s32.totalorder %s1152_s27, 0 }
   0x5   : > { %s1099_s29 = smov [#allocation4]   ;;  %s1041_s9 = scalar_lea.vmem %s215_s26, 6144 }
   0x6   : > { %p1156_p2 = pnand %p856_p0, %p202_p1  ;;  %s230_s30 = sshll.u32 %s1099_s29, 4  ;;  %s231_s30 = int_to_ptr.vmem [resolvable:$true] %s230_s30 }
   0x7   : > { %p1042_p7 = scmp.ne.s32.totalorder %s215_s26, %s1041_s9  ;;  %p1049_p10 = scmp.lt.s32.totalorder %s215_s26, %s215_s26 }
   0x8   : > { %p997_p4 = pneg %p1156_p2  ;;  %p1050_p11 = scmp.lt.s32.totalorder %s1041_s9, %s1041_s9 }
   0xa   : > { %p1165_p5 = pnand %p1004_p3, %p997_p4  ;;  %p1051_p12 = por %p1050_p11, %p1049_p10 }
   0xc   : > { %p1032_p6 = pneg %p1165_p5 }
   0xe   : > { %p1044_p8 = pnand %p1042_p7, %p1032_p6 }
  0x10   : > { %p1045_p9 = pneg %p1044_p8 }
  0x12   : > { %p1052_p13 = pnand %p1051_p12, %p1045_p9 }
  0x14   : > { %1055 = shalt.err (!%p1052_p13)
}
  0x15   : > { %s1100_s10 = smov 384   ;;  %s1101_s11 = smov 24  }
  0x16   : > { %1000 = dma.hbm_to_vmem [thread:$0]  (!%p1165_p5), %s1277_s1, 6144, %s215_s26, [#allocation3], %s1100_s10, %s1100_s10, %s1101_s11  }
  0x17   : > { %s1067_s14 = scalar_lea.vmem %s231_s30, 2048  ;;  %p1075_p7 = scmp.lt.s32.totalorder %s231_s30, %s231_s30 }
  0x18   : > { %p1068_p0 = scmp.ne.s32.totalorder %s231_s30, %s1067_s14  ;;  %p1076_p8 = scmp.lt.s32.totalorder %s1067_s14, %s1067_s14 }
  0x1a   : > { %p1070_p1 = pnand %p1068_p0, %p1032_p6  ;;  %p1077_p10 = por %p1076_p8, %p1075_p7 }
  0x1c   : > { %p1071_p4 = pneg %p1070_p1 }
  0x1e   : > { %p1078_p9 = pnand %p1077_p10, %p1071_p4 }
  0x20   : > { %1081 = shalt.err (!%p1078_p9)
}
  0x21   : > { %s1102_s15 = smov 128   ;;  %s1103_s16 = smov 8  }
  0x22   : > { %1003 = dma.hbm_to_vmem [thread:$0]  (!%p1165_p5), %s1279_s3, 2048, %s231_s30, [#allocation5], %s1102_s15, %s1102_s15, %s1103_s16  }
  0x23   : > { %262 = sbr.rel (%p1156_p2) target bundleno = 1486 (0x5ce), region = 48 }
  0x28   : > { %1087 = dma.done.wait (%p1004_p3), [#allocation3], 6144  }
  0x29   : > { %1089 = vsyncadd (%p1004_p3), [#allocation3], 4294961152 }
  0x2a   : > { %1091 = dma.done.wait (%p1004_p3), [#allocation5], 2048  }
  0x2b   : > { %1093 = vsyncadd (%p1004_p3), [#allocation5], 4294965248  ;;  %v1104_v0 = vmov 0.0   ;;  %v351_v1 = vld [vmem:[#allocation2 + $0x170] sm:$0xff]  ;;  %v350_v2 = vld [vmem:[#allocation2 + $0x168] sm:$0xff]  ;;  %p296_p2 = scmp.lt.s32.totalorder %s1152_s27, 1 }
  0x2c   : > { %417 = vmatprep.mubr.f32.mxu0 %v1104_v0  ;;  %909 = vmatprep.subr.mxu1 %v1104_v0  ;;  %v348_v3 = vld [vmem:[#allocation2 + $0x158] sm:$0xff]  ;;  %v347_v4 = vld [vmem:[#allocation2 + $0x150] sm:$0xff]  ;;  %v345_v5 = vld [vmem:[#allocation2 + $0x140] sm:$0xff]  ;;  %vm1105_vm0 = vmmov 0   ;;  %vm565_vm1 = vcmask 64512  }
  0x2d   : > { %353 = vmatprep.subr.mxu0 %v351_v1  ;;  %v344_v6 = vld [vmem:[#allocation2 + $0x138] sm:$0xff]  ;;  %v342_v7 = vld [vmem:[#allocation2 + $0x128] sm:$0xff]  ;;  %v341_v8 = vld [vmem:[#allocation2 + $0x120] sm:$0xff]  ;;  %s1287_s27 = smov (!%p296_p2, %s1152_s27), 1  ;;  %941 = vmatprep.mubr.msk.f32.mxu1 %vm1105_vm0, %v1104_v0 }
  0x2e   : > { %354 = vmatpush1.msra.mxu0 %v350_v2  ;;  %v339_v9 = vld [vmem:[#allocation2 + $0x110] sm:$0xff]  ;;  %v338_v10 = vld [vmem:[#allocation2 + $0x108] sm:$0xff]  ;;  %v336_v11 = vld [vmem:[#allocation2 + $0xf8] sm:$0xff]  ;;  %s863_s19 = sshll.u32 %s1287_s27, 3 }
  0x2f   : > { %355 = vmatprep.subr.mxu0 %v348_v3  ;;  %v335_v12 = vld [vmem:[#allocation2 + $0xf0] sm:$0xff]  ;;  %v333_v13 = vld [vmem:[#allocation2 + $0xe0] sm:$0xff]  ;;  %v332_v14 = vld [vmem:[#allocation2 + $0xd8] sm:$0xff]  ;;  %s299_s22 = scalar_lea.vmem %s1276_s0, %s863_s19  ;;  %s303_s12 = scalar_lea.vmem %s1283_s7, %s863_s19 }
  0x30   : > { %356 = vmatpush1.msra.mxu0 %v347_v4  ;;  %v352_v15 = vld [vmem:[#allocation2 + $0x178] sm:$0xff]  ;;  %v349_v16 = vld [vmem:[#allocation2 + $0x160] sm:$0xff]  ;;  %v330_v17 = vld [vmem:[#allocation2 + $0xc8] sm:$0xff] }
  0x31   : > { %357 = vmatprep.subr.mxu0 %v345_v5  ;;  %910 = vmatpush3.msra.mxu1 %v352_v15  ;;  %v329_v18 = vld [vmem:[#allocation2 + $0xc0] sm:$0xff]  ;;  %v346_v19 = vld [vmem:[#allocation2 + $0x148] sm:$0xff]  ;;  %v327_v20 = vld [vmem:[#allocation2 + $0xb0] sm:$0xff] }
  0x32   : > { %358 = vmatpush1.msra.mxu0 %v344_v6  ;;  %911 = vmatprep.subr.mxu1 %v1104_v0  ;;  %v326_v21 = vld [vmem:[#allocation2 + $0xa8] sm:$0xff]  ;;  %v343_v22 = vld [vmem:[#allocation2 + $0x130] sm:$0xff]  ;;  %v324_v23 = vld [vmem:[#allocation2 + $0x98] sm:$0xff] }
  0x33   : > { %359 = vmatprep.subr.mxu0 %v342_v7  ;;  %912 = vmatpush3.msra.mxu1 %v349_v16  ;;  %v323_v24 = vld [vmem:[#allocation2 + $0x90] sm:$0xff]  ;;  %v340_v25 = vld [vmem:[#allocation2 + $0x118] sm:$0xff]  ;;  %v321_v26 = vld [vmem:[#allocation2 + $0x80] sm:$0xff] }
  0x34   : > { %360 = vmatpush1.msra.mxu0 %v341_v8  ;;  %913 = vmatprep.subr.mxu1 %v1104_v0  ;;  %v320_v27 = vld [vmem:[#allocation2 + $0x78] sm:$0xff]  ;;  %v337_v28 = vld [vmem:[#allocation2 + $0x100] sm:$0xff]  ;;  %v318_v29 = vld [vmem:[#allocation2 + $0x68] sm:$0xff] }
  0x35   : > { %361 = vmatprep.subr.mxu0 %v339_v9  ;;  %914 = vmatpush3.msra.mxu1 %v346_v19  ;;  %v317_v30 = vld [vmem:[#allocation2 + $0x60] sm:$0xff]  ;;  %v334_v31 = vld [vmem:[#allocation2 + $0xe8] sm:$0xff]  ;;  %v315_v32 = vld [vmem:[#allocation2 + $0x50] sm:$0xff] }
  0x36   : > { %362 = vmatpush1.msra.mxu0 %v338_v10  ;;  %915 = vmatprep.subr.mxu1 %v1104_v0  ;;  %v314_v33 = vld [vmem:[#allocation2 + $0x48] sm:$0xff]  ;;  %v331_v34 = vld [vmem:[#allocation2 + $0xd0] sm:$0xff]  ;;  %v312_v35 = vld [vmem:[#allocation2 + $0x38] sm:$0xff] }
  0x37   : > { %363 = vmatprep.subr.mxu0 %v336_v11  ;;  %916 = vmatpush3.msra.mxu1 %v343_v22  ;;  %v311_v36 = vld [vmem:[#allocation2 + $0x30] sm:$0xff]  ;;  %v328_v37 = vld [vmem:[#allocation2 + $0xb8] sm:$0xff]  ;;  %v309_v38 = vld [vmem:[#allocation2 + $0x20] sm:$0xff] }
  0x38   : > { %364 = vmatpush1.msra.mxu0 %v335_v12  ;;  %917 = vmatprep.subr.mxu1 %v1104_v0  ;;  %v308_v39 = vld [vmem:[#allocation2 + $0x18] sm:$0xff]  ;;  %v325_v40 = vld [vmem:[#allocation2 + $0xa0] sm:$0xff]  ;;  %v306_v41 = vld [vmem:[#allocation2 + $0x8] sm:$0xff] }
  0x39   : > { %365 = vmatprep.subr.mxu0 %v333_v13  ;;  %918 = vmatpush3.msra.mxu1 %v340_v25  ;;  %v305_v42 = vld [vmem:[#allocation2] sm:$0xff]  ;;  %v322_v43 = vld [vmem:[#allocation2 + $0x88] sm:$0xff]  ;;  %v319_v45 = vld [vmem:[#allocation2 + $0x70] sm:$0xff] }
  0x3a   : > { %366 = vmatpush1.msra.mxu0 %v332_v14  ;;  %919 = vmatprep.subr.mxu1 %v1104_v0  ;;  %v1220_v44 = vld [vmem:[%s299_s22] sm:$0xff]  ;;  %v316_v46 = vld [vmem:[#allocation2 + $0x58] sm:$0xff]  ;;  %v310_v48 = vld [vmem:[#allocation2 + $0x28] sm:$0xff] }
  0x3b   : > { %367 = vmatprep.subr.mxu0 %v330_v17  ;;  %920 = vmatpush3.msra.mxu1 %v337_v28  ;;  %v313_v47 = vld [vmem:[#allocation2 + $0x40] sm:$0xff]  ;;  %v307_v49 = vld [vmem:[#allocation2 + $0x10] sm:$0xff]  ;;  %v668_v1 = vld [vmem:[#allocation4 + $0x78] sm:$0xff]  ;;  %v752_v28 = vlaneseq }
  0x3c   : > { %368 = vmatpush1.msra.mxu0 %v329_v18  ;;  %921 = vmatprep.subr.mxu1 %v1104_v0  ;;  %v494_v54 = vld [vmem:[%s1278_s2] sm:$0xff]  ;;  %v667_v2 = vld [vmem:[#allocation4 + $0x70] sm:$0xff]  ;;  %v666_v3 = vld [vmem:[#allocation4 + $0x68] sm:$0xff] }
  0x3d   : > { %369 = vmatprep.subr.mxu0 %v327_v20  ;;  %922 = vmatpush3.msra.mxu1 %v334_v31  ;;  %v665_v4 = vld [vmem:[#allocation4 + $0x60] sm:$0xff]  ;;  %v664_v5 = vld [vmem:[#allocation4 + $0x58] sm:$0xff]  ;;  %v663_v6 = vld [vmem:[#allocation4 + $0x50] sm:$0xff] }
  0x3e   : > { %370 = vmatpush1.msra.mxu0 %v326_v21  ;;  %923 = vmatprep.subr.mxu1 %v1104_v0  ;;  %v662_v7 = vld [vmem:[#allocation4 + $0x48] sm:$0xff]  ;;  %v661_v8 = vld [vmem:[#allocation4 + $0x40] sm:$0xff]  ;;  %v660_v9 = vld [vmem:[#allocation4 + $0x38] sm:$0xff] }
  0x3f   : > { %371 = vmatprep.subr.mxu0 %v324_v23  ;;  %924 = vmatpush3.msra.mxu1 %v331_v34  ;;  %v659_v10 = vld [vmem:[#allocation4 + $0x30] sm:$0xff]  ;;  %v658_v11 = vld [vmem:[#allocation4 + $0x28] sm:$0xff]  ;;  %v657_v12 = vld [vmem:[#allocation4 + $0x20] sm:$0xff] }
  0x40   : > { %372 = vmatpush1.msra.mxu0 %v323_v24  ;;  %925 = vmatprep.subr.mxu1 %v1104_v0  ;;  %v656_v13 = vld [vmem:[#allocation4 + $0x18] sm:$0xff]  ;;  %v655_v14 = vld [vmem:[#allocation4 + $0x10] sm:$0xff]  ;;  %v654_v15 = vld [vmem:[#allocation4 + $0x8] sm:$0xff] }
  0x41   : > { %373 = vmatprep.subr.mxu0 %v321_v26  ;;  %926 = vmatpush3.msra.mxu1 %v328_v37  ;;  %v653_v22 = vld [vmem:[#allocation4] sm:$0xff] }
  0x42   : > { %374 = vmatpush1.msra.mxu0 %v320_v27  ;;  %927 = vmatprep.subr.mxu1 %v1104_v0  ;;  %v866_v25 = vld [vmem:[%s1280_s4] ss:$0 sm:$0xff] }
  0x43   : > { %375 = vmatprep.subr.mxu0 %v318_v29  ;;  %928 = vmatpush3.msra.mxu1 %v325_v40  ;;  %v753_v29 = vand.u32 127, %v752_v28 }
  0x44   : > { %376 = vmatpush1.msra.mxu0 %v317_v30  ;;  %929 = vmatprep.subr.mxu1 %v1104_v0 }
  0x45   : > { %377 = vmatprep.subr.mxu0 %v315_v32  ;;  %930 = vmatpush3.msra.mxu1 %v322_v43  ;;  %vm754_vm2 = vcmp.lt.s32.totalorder %v753_v29, 32 }
  0x46   : > { %378 = vmatpush1.msra.mxu0 %v314_v33  ;;  %931 = vmatprep.subr.mxu1 %v1104_v0 }
  0x47   : > { %379 = vmatprep.subr.mxu0 %v312_v35  ;;  %932 = vmatpush3.msra.mxu1 %v319_v45 }
  0x48   : > { %380 = vmatpush1.msra.mxu0 %v311_v36  ;;  %933 = vmatprep.subr.mxu1 %v1104_v0 }
  0x49   : > { %381 = vmatprep.subr.mxu0 %v309_v38  ;;  %934 = vmatpush3.msra.mxu1 %v316_v46 }
  0x4a   : > { %382 = vmatpush1.msra.mxu0 %v308_v39  ;;  %935 = vmatprep.subr.mxu1 %v1104_v0  ;;  %v867_v39 = vld [vmem:[%s1281_s5] ss:$0 sm:$0xff] }
  0x4b   : > { %383 = vmatprep.subr.mxu0 %v306_v41  ;;  %936 = vmatpush3.msra.mxu1 %v313_v47  ;;  %v868_v41 = vld [vmem:[%s1282_s6] ss:$0 sm:$0xff] }
  0x4c   : > { %384 = vmatpush1.msra.mxu0 %v305_v42  ;;  %937 = vmatprep.subr.mxu1 %v1104_v0 }
  0x4d   : > { %418 = vmatmul.mubr.f32.vlgmr.msra.gmra.mxu0 %v1220_v44  ;;  %954 = vmatprep.subr.mxu0 %v1104_v0 }
  0x4e   : > { %938 = vmatpush3.msra.mxu1 %v310_v48  ;;  %986 = vmatprep.mubr.msk.f32.mxu0 %vm1105_vm0, %v1104_v0 }
  0x4f   : > { %939 = vmatprep.subr.mxu1 %v1104_v0  ;;  %955 = vmatpush3.msra.mxu0 %v668_v1 }
  0x50   : > { %940 = vmatpush3.msra.mxu1 %v307_v49  ;;  %956 = vmatprep.subr.mxu0 %v1104_v0 }
  0x51   : > { %942 = vmatmul.mubr.f32.vlgmr.msra.gmra.mxu1 %v1220_v44  ;;  %944 = vmatprep.subr.mxu1 %v1104_v0 }
  0x52   : > { %946 = vmatprep.mubr.msk.f32.mxu1 %vm1105_vm0, %v1104_v0  ;;  %957 = vmatpush3.msra.mxu0 %v667_v2 }
  0x53   : > { %958 = vmatprep.subr.mxu0 %v1104_v0 }
  0x54   : > { %959 = vmatpush3.msra.mxu0 %v666_v3 }
  0x55   : > { %960 = vmatprep.subr.mxu0 %v1104_v0 }
  0x56   : > { %961 = vmatpush3.msra.mxu0 %v665_v4 }
  0x57   : > { %962 = vmatprep.subr.mxu0 %v1104_v0 }
  0x58   : > { %963 = vmatpush3.msra.mxu0 %v664_v5 }
  0x59   : > { %964 = vmatprep.subr.mxu0 %v1104_v0 }
  0x5a   : > { %965 = vmatpush3.msra.mxu0 %v663_v6 }
  0x5b   : > { %966 = vmatprep.subr.mxu0 %v1104_v0 }
  0x5c   : > { %967 = vmatpush3.msra.mxu0 %v662_v7 }
  0x5d   : > { %968 = vmatprep.subr.mxu0 %v1104_v0 }
  0x5e   : > { %969 = vmatpush3.msra.mxu0 %v661_v8 }
  0x5f   : > { %970 = vmatprep.subr.mxu0 %v1104_v0 }
  0x60   : > { %971 = vmatpush3.msra.mxu0 %v660_v9 }
  0x61   : > { %972 = vmatprep.subr.mxu0 %v1104_v0 }
  0x62   : > { %973 = vmatpush3.msra.mxu0 %v659_v10 }
  0x63   : > { %974 = vmatprep.subr.mxu0 %v1104_v0 }
  0x64   : > { %975 = vmatpush3.msra.mxu0 %v658_v11 }
  0x65   : > { %976 = vmatprep.subr.mxu0 %v1104_v0 }
  0x66   : > { %977 = vmatpush3.msra.mxu0 %v657_v12 }
  0x67   : > { %978 = vmatprep.subr.mxu0 %v1104_v0 }
  0x68   : > { %979 = vmatpush3.msra.mxu0 %v656_v13 }
  0x69   : > { %980 = vmatprep.subr.mxu0 %v1104_v0 }
  0x6a   : > { %981 = vmatpush3.msra.mxu0 %v655_v14 }
  0x6b   : > { %982 = vmatprep.subr.mxu0 %v1104_v0 }
  0x6c   : > { %983 = vmatpush3.msra.mxu0 %v654_v15 }
  0x6d   : > { %984 = vmatprep.subr.mxu0 %v1104_v0 }
  0x6e   : > { %985 = vmatpush3.msra.mxu0 %v653_v22 }
 0x10d   : > { %v419_v50 = vpop.f32.mrf.mxu0 }
 0x10f   : > { %v421_v51 = vpop.f32.mrf.mxu0 }
 0x110   : > { %945 = vmatpush3.xpose.msra.mxu1 %v421_v51 }
 0x111   : > { %949 = vmatprep.subr.mxu1 %v1104_v0  ;;  %v490_v52 = vpop.f32.mrf.mxu1 }
 0x113   : > { %947 = vmatmul.mubr.f32.vlgmr.msra.gmra.mxu1 %v419_v50  ;;  %v943_v53 = vpop.f32.mrf.mxu1 }
 0x114   : > { %951 = vmatprep.mubr.msk.f32.mxu1 %vm1105_vm0, %v1104_v0  ;;  %950 = vmatpush3.msra.mxu1 %v490_v52 }
 0x1d3   : > { %v561_v55 = vpop.f32.mrf.mxu1 }
 0x1d4   : > { %v562_v56 = vadd.f32 %v561_v55, %v494_v54 }
 0x1d5   : > { %v948_v57 = vpop.f32.mrf.mxu1 }
 0x1d6   : > { %v566_v58 = vsel %vm565_vm1, %v562_v56, -inf }
 0x1d7   : > { %567 = vmax.xlane.f32.xlu0 %v566_v58 }
 0x260   : > { %v568_v59 = vpop.xlane.xlu0 %567 }
 0x261   : > { %v569_v60 = vsub.f32 %v562_v56, %v568_v59 }
 0x263   : > { %v570_v61 = vmul.f32 1.442695, %v569_v60 }
 0x265   : > { %1024 = vpow2.f32 %v570_v61 }
 0x272   : > { %v1025_v62 = vpop.eup %1024 }
 0x273   : > { %v572_v63 = vsel %vm565_vm1, %v1025_v62, 0.0 }
 0x274   : > { %573 = vadd.xlane.f32.xlu0 %v572_v63 }
 0x2fd   : > { %v574_v16 = vpop.xlane.xlu0 %573 }
 0x2fe   : > { %1026 = vrcp.f32 %v574_v16 }
 0x30b   : > { %v1027_v17 = vpop.eup %1026 }
 0x30c   : > { %v576_v18 = vmul.f32 %v1027_v17, %v574_v16 }
 0x30e   : > { %v577_v19 = vsub.f32 2.0, %v576_v18 }
 0x310   : > { %v578_v20 = vmul.f32 %v1027_v17, %v577_v19 }
 0x312   : > { %v579_v21 = vmul.f32 %v1025_v62, %v578_v20 }
 0x314   : > { %952 = vmatmul.mubr.msk.f32.vlgmr.msra.gmra.mxu1 %vm565_vm1, %v579_v21 }
 0x3d4   : > { %v649_v23 = vpop.f32.mrf.mxu1 }
 0x3d5   : > { %987 = vmatmul.mubr.f32.vlgmr.msra.gmra.mxu0 %v649_v23 }
 0x3d6   : > { %v953_v24 = vpop.f32.mrf.mxu1 }
 0x495   : > { %v742_v26 = vpop.f32.mrf.mxu0 }
 0x496   : > { %v743_v0 = vadd.f32 %v866_v25, %v742_v26 }
 0x497   : > { %v988_v27 = vpop.f32.mrf.mxu0 }
 0x498   : > { %748 = vadd.xlane.f32.xlu1 %v743_v0 }
 0x521   : > { %v749_v30 = vpop.xlane.xlu1 %748 }
 0x522   : > { %v750_v31 = vmul.f32 0.03125, %v749_v30 }
 0x524   : > { %v751_v32 = vsub.f32 %v743_v0, %v750_v31 }
 0x526   : > { %v755_v33 = vsel %vm754_vm2, %v751_v32, 0.0 }
 0x527   : > { %v756_v34 = vmul.f32 %v755_v33, %v755_v33 }
 0x529   : > { %757 = vadd.xlane.f32.xlu1 %v756_v34 }
 0x5b2   : > { %v758_v35 = vpop.xlane.xlu1 %757 }
 0x5b3   : > { %v759_v36 = vmul.f32 0.03125, %v758_v35 }
 0x5b5   : > { %v760_v37 = vadd.f32 1e-05, %v759_v36 }
 0x5b7   : > { %1028 = vrsqrt.f32 %v760_v37 }
 0x5c4   : > { %v1029_v38 = vpop.eup %1028 }
 0x5c5   : > { %v762_v40 = vmul.f32 %v1029_v38, %v751_v32 }
 0x5c7   : > { %v769_v42 = vmul.f32 %v867_v39, %v762_v40 }
 0x5c9   : > { %v776_v43 = vadd.f32 %v868_v41, %v769_v42 }
 0x5cb   : > { %v777_v45 = vadd.f32 %v776_v43, %v1220_v44 }
 0x5cd   : > { %778 = vst [vmem:[%s303_s12] sm:$0xff] %v777_v45 }
 0x5ce PF: > { %s19_s24 = sadd.s32 1, %s1096_s24  }
 0x5cf   : > { %p16_p3 = scmp.ge.s32.totalorder %s19_s24, 4  }
 0x5d1   :  { %18 = sbr.rel (!%p16_p3) target bundleno = 2 (0x2), region = 87 }
 0x5d6   :  { %798 = vsyncpa [#allocation3], 1 }
 0x5d7   :  { %800 = vsyncpa [#allocation3 + $0x1], 1 }
 0x5d8   :  { %801 = vsyncpa [#allocation5], 1 }

</bundles_post_ra>
